<compile_context>
chip_gen: v5e
topology: v5e:2x2
jax: 0.10.0
libtpu: 0.0.40
codegen_flags: <defaults>
</compile_context>

<pallas_src>
import jax
import jax.numpy as jnp
from jax.experimental import pallas as pl
from jax.experimental.pallas import tpu as pltpu


def _valuenet_kernel(xT_ref, w1_ref, b1_ref, w2_ref, b2_ref, o_ref):
    # xT: (S, tb)   batch on the lane axis
    # w1: (H, S)    b1: (H, 1)    w2: (H, 1)    b2: (1,) scalar in SMEM
    # o:  (1, tb)   lane-dense output block
    S = xT_ref.shape[0]
    xT = xT_ref[...]
    w1 = w1_ref[...]

    # fc1 as S unrolled VPU FMAs (outer-product accumulate); no MXU push/pop
    # round trip on the critical path of a memory-bound kernel.
    h = w1[:, 0:1] * xT[0:1, :]                      # (H,1)*(1,tb) -> (H,tb)
    for s in range(1, S):                            # S is tiny & static
        h = h + w1[:, s:s + 1] * xT[s:s + 1, :]
    h = jnp.maximum(h + b1_ref[...], 0.0)            # ReLU, (H, tb)

    # fc2: scale rows by w2 and reduce across sublanes (XLU), stays lane-dense.
    y = jnp.sum(h * w2_ref[...], axis=0, keepdims=True) + b2_ref[0]   # (1, tb)

    # NOTE: the reference module really does apply ReLU after fc2; keep it.
    o_ref[...] = jnp.maximum(y, 0.0).astype(o_ref.dtype)


def _choose_tile(batch, block_b):
    """Pick the batch (lane) tile.

    * batch <= 256: one full-extent block (legal for any size, no padding).
    * larger:       multiple-of-128 lane tile, capped at ~ceil(B/2) so the
                    grid has >= 2 steps ("parallel" axis shards across the
                    2 TensorCores on v7x; harmless on v5e/v6e).
    """
    if batch <= 256:
        return batch
    block_b = max(128, (block_b // 128) * 128)
    half = max(128, (pl.cdiv(batch, 2) // 128) * 128)
    return min(block_b, half)


def value_net_forward(x, w1, b1, w2, b2, *, block_b=1024):
    """Pallas ValueNet forward.

    x:  (B, S) f32
    w1: (H, S), b1: (H,)   -- PyTorch Linear layout
    w2: (1, H), b2: (1,)
    returns (B, 1) f32
    """
    B, S = x.shape
    H = w1.shape[0]

    # One-time layout prep: batch goes on the lane axis.
    xT = jnp.asarray(x).astype(jnp.float32).T                    # (S, B)
    w1 = jnp.asarray(w1).astype(jnp.float32)                     # (H, S)
    b1_col = jnp.asarray(b1).reshape(H, 1).astype(jnp.float32)   # (H, 1)
    w2_col = jnp.asarray(w2).reshape(H, 1).astype(jnp.float32)   # (H, 1)
    b2_s = jnp.asarray(b2).reshape(1).astype(jnp.float32)        # (1,) -> SMEM

    tb = _choose_tile(B, block_b)
    grid = (pl.cdiv(B, tb),)   # ragged last block: reads padded, writes masked

    cost = pl.CostEstimate(
        flops=2 * B * H * (S + 1),
        transcendentals=0,
        bytes_accessed=(B * S + B + H * S + 3 * H + 1) * 4,
    )

    out = pl.pallas_call(
        _valuenet_kernel,
        out_shape=jax.ShapeDtypeStruct((1, B), jnp.float32),
        grid=grid,
        in_specs=[
            pl.BlockSpec((S, tb), lambda i: (0, i)),             # x^T tiled on lanes
            pl.BlockSpec((H, S), lambda i: (0, 0)),              # w1: VMEM-resident
            pl.BlockSpec((H, 1), lambda i: (0, 0)),              # b1
            pl.BlockSpec((H, 1), lambda i: (0, 0)),              # w2
            pl.BlockSpec(memory_space=pltpu.MemorySpace.SMEM),   # b2 scalar
        ],
        out_specs=pl.BlockSpec((1, tb), lambda i: (0, i)),        # lane-dense output
        compiler_params=pltpu.CompilerParams(
            dimension_semantics=("parallel",),
        ),
        cost_estimate=cost,
    )(xT, w1, b1_col, w2_col, b2_s)

    # (1, B) -> (B, 1) is a free row-major reshape.
    return out.reshape(B, 1)


def init_value_net_params(key, state_dim, hidden_dim):
    """Deterministic init mimicking torch.nn.Linear default U(-1/sqrt(fan_in), +)."""
    k1, k2, k3, k4 = jax.random.split(key, 4)
    bound1 = 1.0 / jnp.sqrt(jnp.float32(state_dim))
    bound2 = 1.0 / jnp.sqrt(jnp.float32(hidden_dim))
    w1 = jax.random.uniform(k1, (hidden_dim, state_dim), jnp.float32, -bound1, bound1)
    b1 = jax.random.uniform(k2, (hidden_dim,), jnp.float32, -bound1, bound1)
    w2 = jax.random.uniform(k3, (1, hidden_dim), jnp.float32, -bound2, bound2)
    b2 = jax.random.uniform(k4, (1,), jnp.float32, -bound2, bound2)
    return w1, b1, w2, b2


def _reference(x, w1, b1, w2, b2):
    h = jnp.maximum(x @ w1.T + b1, 0.0)
    return jnp.maximum(h @ w2.T + b2, 0.0)


if __name__ == "__main__":
    key = jax.random.PRNGKey(0)
    kx1, kx2, kx3, kp = jax.random.split(key, 4)

    state_dim, hidden_dim = 4, 32
    w1, b1, w2, b2 = init_value_net_params(kp, state_dim, hidden_dim)

    # Case 1: tiny batch -> single full-extent block.
    x1 = jax.random.normal(kx1, (8, state_dim), jnp.float32)
    out1 = jax.block_until_ready(value_net_forward(x1, w1, b1, w2, b2))
    ref1 = _reference(x1, w1, b1, w2, b2)
    assert out1.shape == (8, 1)
    assert jnp.allclose(out1, ref1, atol=1e-5, rtol=1e-5)

    # Case 2: ragged small batch (no pad, full-extent block).
    x2 = jax.random.normal(kx2, (10, state_dim), jnp.float32)
    out2 = jax.block_until_ready(value_net_forward(x2, w1, b1, w2, b2))
    ref2 = _reference(x2, w1, b1, w2, b2)
    assert out2.shape == (10, 1)
    assert jnp.allclose(out2, ref2, atol=1e-5, rtol=1e-5)

    # Case 3: multi-step grid with a ragged (masked) last block — verifies the
    # pad-free cdiv grid never leaks garbage lanes past B.
    x3 = jax.random.normal(kx3, (300, state_dim), jnp.float32)
    out3 = jax.block_until_ready(value_net_forward(x3, w1, b1, w2, b2))
    ref3 = _reference(x3, w1, b1, w2, b2)
    assert out3.shape == (300, 1)
    assert jnp.allclose(out3, ref3, atol=1e-5, rtol=1e-5)

    print("KERNEL_OK")
</pallas_src>

<mosaic_0001>
module attributes {stable_mosaic.version = 11 : i64} {
  func.func @_valuenet_kernel(%arg0: i32, %arg1: memref<4x8xf32, #tpu.memory_space<vmem>>, %arg2: memref<32x4xf32, #tpu.memory_space<vmem>>, %arg3: memref<32x1xf32, #tpu.memory_space<vmem>>, %arg4: memref<32x1xf32, #tpu.memory_space<vmem>>, %arg5: memref<1xf32, #tpu.memory_space<smem>>, %arg6: memref<1x8xf32, #tpu.memory_space<vmem>>) attributes {dimension_semantics = [#tpu.dimension_semantics<parallel>], iteration_bounds = array<i64: 1>, scalar_prefetch = 0 : i64, scratch_operands = 0 : i64, tpu.core_type = #tpu.core_type<tc>, window_params = [{transform_indices = @transform_0, window_bounds = array<i64: 4, 8>}, {pipeline_mode = #tpu.pipeline_mode<synchronous>, transform_indices = @transform_1, window_bounds = array<i64: 32, 4>}, {pipeline_mode = #tpu.pipeline_mode<synchronous>, transform_indices = @transform_2, window_bounds = array<i64: 32, 1>}, {pipeline_mode = #tpu.pipeline_mode<synchronous>, transform_indices = @transform_3, window_bounds = array<i64: 32, 1>}, {transform_indices = @transform_4, window_bounds = array<i64: 1>}, {transform_indices = @transform_5, window_bounds = array<i64: 1, 8>}]} {
    %c0 = arith.constant 0 : index
    %c0_0 = arith.constant 0 : index
    %0 = vector.load %arg1[%c0, %c0_0] : memref<4x8xf32, #tpu.memory_space<vmem>>, vector<4x8xf32>
    %c0_1 = arith.constant 0 : index
    %c0_2 = arith.constant 0 : index
    %1 = vector.load %arg2[%c0_1, %c0_2] : memref<32x4xf32, #tpu.memory_space<vmem>>, vector<32x4xf32>
    %2 = vector.extract_strided_slice %1 {offsets = [0, 0], sizes = [32, 1], strides = [1, 1]} : vector<32x4xf32> to vector<32x1xf32>
    %3 = vector.extract_strided_slice %0 {offsets = [0, 0], sizes = [1, 8], strides = [1, 1]} : vector<4x8xf32> to vector<1x8xf32>
    %4 = vector.broadcast %2 : vector<32x1xf32> to vector<32x8xf32>
    %5 = vector.broadcast %3 : vector<1x8xf32> to vector<32x8xf32>
    %6 = arith.mulf %4, %5 : vector<32x8xf32>
    %7 = vector.extract_strided_slice %1 {offsets = [0, 1], sizes = [32, 1], strides = [1, 1]} : vector<32x4xf32> to vector<32x1xf32>
    %8 = vector.extract_strided_slice %0 {offsets = [1, 0], sizes = [1, 8], strides = [1, 1]} : vector<4x8xf32> to vector<1x8xf32>
    %9 = vector.broadcast %7 : vector<32x1xf32> to vector<32x8xf32>
    %10 = vector.broadcast %8 : vector<1x8xf32> to vector<32x8xf32>
    %11 = arith.mulf %9, %10 : vector<32x8xf32>
    %12 = arith.addf %6, %11 : vector<32x8xf32>
    %13 = vector.extract_strided_slice %1 {offsets = [0, 2], sizes = [32, 1], strides = [1, 1]} : vector<32x4xf32> to vector<32x1xf32>
    %14 = vector.extract_strided_slice %0 {offsets = [2, 0], sizes = [1, 8], strides = [1, 1]} : vector<4x8xf32> to vector<1x8xf32>
    %15 = vector.broadcast %13 : vector<32x1xf32> to vector<32x8xf32>
    %16 = vector.broadcast %14 : vector<1x8xf32> to vector<32x8xf32>
    %17 = arith.mulf %15, %16 : vector<32x8xf32>
    %18 = arith.addf %12, %17 : vector<32x8xf32>
    %19 = vector.extract_strided_slice %1 {offsets = [0, 3], sizes = [32, 1], strides = [1, 1]} : vector<32x4xf32> to vector<32x1xf32>
    %20 = vector.extract_strided_slice %0 {offsets = [3, 0], sizes = [1, 8], strides = [1, 1]} : vector<4x8xf32> to vector<1x8xf32>
    %21 = vector.broadcast %19 : vector<32x1xf32> to vector<32x8xf32>
    %22 = vector.broadcast %20 : vector<1x8xf32> to vector<32x8xf32>
    %23 = arith.mulf %21, %22 : vector<32x8xf32>
    %24 = arith.addf %18, %23 : vector<32x8xf32>
    %c0_3 = arith.constant 0 : index
    %c0_4 = arith.constant 0 : index
    %25 = vector.load %arg3[%c0_3, %c0_4] : memref<32x1xf32, #tpu.memory_space<vmem>>, vector<32x1xf32>
    %26 = vector.broadcast %25 : vector<32x1xf32> to vector<32x8xf32>
    %27 = arith.addf %24, %26 : vector<32x8xf32>
    %cst = arith.constant 0.000000e+00 : f32
    %28 = vector.broadcast %cst : f32 to vector<32x8xf32>
    %29 = arith.maximumf %27, %28 : vector<32x8xf32>
    %c0_5 = arith.constant 0 : index
    %c0_6 = arith.constant 0 : index
    %30 = vector.load %arg4[%c0_5, %c0_6] : memref<32x1xf32, #tpu.memory_space<vmem>>, vector<32x1xf32>
    %31 = vector.broadcast %30 : vector<32x1xf32> to vector<32x8xf32>
    %32 = arith.mulf %29, %31 : vector<32x8xf32>
    %cst_7 = arith.constant dense<0.000000e+00> : vector<8xf32>
    %33 = vector.multi_reduction <add>, %32, %cst_7 [0] : vector<32x8xf32> to vector<8xf32>
    %34 = vector.shape_cast %33 : vector<8xf32> to vector<1x8xf32>
    %c0_8 = arith.constant 0 : index
    %35 = memref.load %arg5[%c0_8] : memref<1xf32, #tpu.memory_space<smem>>
    %36 = vector.broadcast %35 : f32 to vector<1x8xf32>
    %37 = arith.addf %34, %36 : vector<1x8xf32>
    %cst_9 = arith.constant 0.000000e+00 : f32
    %38 = vector.broadcast %cst_9 : f32 to vector<1x8xf32>
    %39 = arith.maximumf %37, %38 : vector<1x8xf32>
    %c0_10 = arith.constant 0 : index
    %c0_11 = arith.constant 0 : index
    %40 = vector.load %arg6[%c0_10, %c0_11] : memref<1x8xf32, #tpu.memory_space<vmem>>, vector<1x8xf32>
    tpu.vector_store %arg6[%c0_10, %c0_11], %39 {strides = array<i32>} : memref<1x8xf32, #tpu.memory_space<vmem>>, vector<1x8xf32>,
    return
  }
  func.func @transform_0(%arg0: i32) -> (i32, i32) {
    %c0_i32 = arith.constant 0 : i32
    %c0_i32_0 = arith.constant 0 : i32
    return %c0_i32, %arg0 : i32, i32
  }
  func.func @transform_1(%arg0: i32) -> (i32, i32) {
    %c0_i32 = arith.constant 0 : i32
    %c0_i32_0 = arith.constant 0 : i32
    %c0_i32_1 = arith.constant 0 : i32
    return %c0_i32, %c0_i32_0 : i32, i32
  }
  func.func @transform_2(%arg0: i32) -> (i32, i32) {
    %c0_i32 = arith.constant 0 : i32
    %c0_i32_0 = arith.constant 0 : i32
    %c0_i32_1 = arith.constant 0 : i32
    return %c0_i32, %c0_i32_0 : i32, i32
  }
  func.func @transform_3(%arg0: i32) -> (i32, i32) {
    %c0_i32 = arith.constant 0 : i32
    %c0_i32_0 = arith.constant 0 : i32
    %c0_i32_1 = arith.constant 0 : i32
    return %c0_i32, %c0_i32_0 : i32, i32
  }
  func.func @transform_4(%arg0: i32) -> i32 {
    %c0_i32 = arith.constant 0 : i32
    %c0_i32_0 = arith.constant 0 : i32
    return %c0_i32 : i32
  }
  func.func @transform_5(%arg0: i32) -> (i32, i32) {
    %c0_i32 = arith.constant 0 : i32
    %c0_i32_0 = arith.constant 0 : i32
    return %c0_i32, %arg0 : i32, i32
  }
}

</mosaic_0001>

<bundles_post_ra>
// kernel: tpu_custom_call.1
= control target key start
LH: loop header
LB: loop body
LE: loop exit
PB: predicated region body
PF: predicated region fallthrough
CT: control target
= control target key end

     0   :  { %v266_v2 = vmov 1   ;;  %v267_v3 = vmov 0   ;;  %s346_s0 = inlined_call_operand.vmem [shape: f32[4,8], index: 0, kind: input, shape index: {}]   ;;  %s347_s1 = inlined_call_operand.vmem [shape: f32[32,4], index: 1, kind: input, shape index: {}]   ;;  %s348_s2 = inlined_call_operand.vmem [shape: f32[32,1], index: 2, kind: input, shape index: {}]   ;;  %s349_s3 = inlined_call_operand.vmem [shape: f32[32,1], index: 3, kind: input, shape index: {}]   ;;  %s350_s4 = inlined_call_operand.<no memory space> [shape: f32[1], index: 4, kind: input, shape index: {}]   ;;  %s351_s5 = inlined_call_operand.hbm [shape: f32[1,8], index: 5, kind: output, shape index: {}]  }
   0x1   :  { %v25_v0 = vld [vmem:[%s347_s1 + $0x10] sm:$0xff]  ;;  %v23_v1 = vld [vmem:[%s347_s1] sm:$0xff]  ;;  %230 = vset.pattern.permute.xlu0 %v266_v2  ;;  %228 = vset.pattern.permute.xlu1 %v267_v3 }
   0x2   :  { %11 = vsyncpa [#allocation4], 0  ;;  %229 = vset.pattern.permute.xlu2 %v266_v2  ;;  %61 = vperm.xlu0 %230, %v25_v0   ;;  %v26_v4 = vld [vmem:[%s347_s1 + $0x18] sm:$0xff]  ;;  %v24_v5 = vld [vmem:[%s347_s1 + $0x8] sm:$0xff]  ;;  %v268_v6 = vmov 2   ;;  %v269_v8 = vmov 3  }
   0x3   :  { %39 = vperm.xlu1 %228, %v25_v0   ;;  %53 = vperm.xlu2 %229, %v23_v1   ;;  %v127_v7 = vld [vmem:[%s348_s2] sm:$0xff]  ;;  %v160_v9 = vld [vmem:[%s349_s3 + $0x8] sm:$0xff]  ;;  %v129_v11 = vld [vmem:[%s348_s2 + $0x10] sm:$0xff]  ;;  %vm187_vm0 = vcmask 64512   ;;  %s270_s17 = smov [#allocation3]   ;;  %s214_s21 = sshll.u32 %s351_s5, 4  ;;  %s215_s21 = int_to_ptr.hbm [resolvable:$true] %s214_s21 }
   0x4   :  { %v128_v10 = vld [vmem:[%s348_s2 + $0x8] sm:$0xff]  ;;  %v130_v12 = vld [vmem:[%s348_s2 + $0x18] sm:$0xff]  ;;  %v159_v13 = vld [vmem:[%s349_s3] sm:$0xff]  ;;  %s212_s18 = sshll.u32 %s270_s17, 4  ;;  %vm205_vm1 = vcmask 57344   ;;  %s213_s18 = int_to_ptr.vmem [resolvable:$true] %s212_s18 }
   0x5   :  { %v161_v14 = vld [vmem:[%s349_s3 + $0x10] sm:$0xff]  ;;  %v162_v15 = vld [vmem:[%s349_s3 + $0x18] sm:$0xff]  ;;  %v22_v29 = vld [vmem:[%s346_s0] sm:$0xf] }
   0x6   :  { %v47_v31 = vperm.slane %v22_v29, 0  ;;  %v68_v32 = vperm.slane %v22_v29, 1  ;;  %v93_v39 = vperm.slane %v22_v29, 2  ;;  %v118_v41 = vperm.slane %v22_v29, 3 }
   0xa   :  { %234 = vset.pattern.permute.xlu0 %v268_v6 }
   0xb   :  { %44 = vperm.xlu1 %228, %v26_v4   ;;  %90 = vperm.xlu0 %234, %v26_v4  }
   0xc   :  { %57 = vperm.xlu2 %229, %v24_v5  }
  0x13   :  { %231 = vset.pattern.permute.xlu1 %v266_v2  ;;  %235 = vset.pattern.permute.xlu0 %v267_v3 }
  0x14   :  { %65 = vperm.xlu1 %231, %v26_v4   ;;  %232 = vset.pattern.permute.xlu2 %v268_v6 }
  0x15   :  { %29 = vperm.xlu0 %235, %v23_v1   ;;  %78 = vperm.xlu2 %232, %v23_v1  }
  0x1c   :  { %233 = vset.pattern.permute.xlu1 %v268_v6 }
  0x1d   :  { %82 = vperm.xlu1 %233, %v24_v5   ;;  %34 = vperm.xlu0 %235, %v24_v5  }
  0x1e   :  { %86 = vperm.xlu2 %232, %v25_v0  }
  0x25   :  { %236 = vset.pattern.permute.xlu1 %v269_v8  ;;  %133 = vperm.xlu0 %235, %v127_v7  }
  0x26   :  { %103 = vperm.xlu1 %236, %v23_v1   ;;  %237 = vset.pattern.permute.xlu2 %v269_v8 }
  0x27   :  { %107 = vperm.xlu2 %237, %v24_v5  }
  0x2d   :  { %170 = vperm.xlu0 %235, %v160_v9  }
  0x2e   :  { %111 = vperm.xlu1 %236, %v25_v0  }
  0x2f   :  { %115 = vperm.xlu2 %237, %v26_v4  }
  0x36   :  { %238 = vset.pattern.permute.xlu1 %v267_v3 }
  0x37   :  { %138 = vperm.xlu1 %238, %v128_v10   ;;  %239 = vset.pattern.permute.xlu2 %v267_v3 }
  0x38   :  { %143 = vperm.xlu2 %239, %v129_v11  }
  0x3f   :  { %148 = vperm.xlu1 %238, %v130_v12  }
  0x40   :  { %165 = vperm.xlu2 %239, %v159_v13  }
  0x47   :  { %175 = vperm.xlu1 %238, %v161_v14  }
  0x48   :  { %180 = vperm.xlu2 %239, %v162_v15  }
  0x5d   :  { %v54_v16 = vpop.permute.xlu2 %53 }
  0x5e   :  { %v69_v38 = vmul.f32 %v68_v32, %v54_v16 }
  0x66   :  { %v58_v18 = vpop.permute.xlu2 %57 }
  0x67   :  { %v70_v35 = vmul.f32 %v68_v32, %v58_v18 }
  0x6f   :  { %v79_v21 = vpop.permute.xlu2 %78 }
  0x70   :  { %v94_v42 = vmul.f32 %v93_v39, %v79_v21 }
  0x74   :  { %v62_v20 = vpop.permute.xlu0 %61 }
  0x75   :  { %v40_v17 = vpop.permute.xlu1 %39  ;;  %v71_v46 = vmul.f32 %v68_v32, %v62_v20 }
  0x76   :  { %v50_v47 = vmul.f32 %v47_v31, %v40_v17 }
  0x78   :  { %v87_v24 = vpop.permute.xlu2 %86  ;;  %v75_v58 = vadd.f32 %v71_v46, %v50_v47 }
  0x79   :  { %v96_v59 = vmul.f32 %v93_v39, %v87_v24 }
  0x7b   :  { %v100_v2 = vadd.f32 %v96_v59, %v75_v58 }
  0x7d   :  { %v45_v19 = vpop.permute.xlu1 %44  ;;  %v91_v23 = vpop.permute.xlu0 %90 }
  0x7e   :  { %v51_v48 = vmul.f32 %v47_v31, %v45_v19  ;;  %v97_v53 = vmul.f32 %v93_v39, %v91_v23 }
  0x81   :  { %v108_v27 = vpop.permute.xlu2 %107 }
  0x82   :  { %v120_v49 = vmul.f32 %v118_v41, %v108_v27 }
  0x86   :  { %v66_v22 = vpop.permute.xlu1 %65 }
  0x87   :  { %v30_v26 = vpop.permute.xlu0 %29  ;;  %v72_v43 = vmul.f32 %v68_v32, %v66_v22 }
  0x88   :  { %v48_v36 = vmul.f32 %v47_v31, %v30_v26 }
  0x89   :  { %v116_v34 = vpop.permute.xlu2 %115  ;;  %v76_v54 = vadd.f32 %v72_v43, %v51_v48 }
  0x8a   :  { %v73_v44 = vadd.f32 %v69_v38, %v48_v36  ;;  %v122_v62 = vmul.f32 %v118_v41, %v116_v34 }
  0x8b   :  { %v101_v1 = vadd.f32 %v97_v53, %v76_v54 }
  0x8c   :  { %v98_v55 = vadd.f32 %v94_v42, %v73_v44 }
  0x8d   :  { %v126_v6 = vadd.f32 %v122_v62, %v101_v1 }
  0x8f   :  { %v83_v25 = vpop.permute.xlu1 %82  ;;  %v35_v30 = vpop.permute.xlu0 %34 }
  0x90   :  { %v49_v33 = vmul.f32 %v47_v31, %v35_v30  ;;  %v95_v45 = vmul.f32 %v93_v39, %v83_v25 }
  0x92   :  { %v74_v40 = vadd.f32 %v70_v35, %v49_v33  ;;  %v144_v52 = vpop.permute.xlu2 %143  ;;  %v202_v33 = vstv %s350_s4 }
  0x94   :  { %v99_v51 = vadd.f32 %v95_v45, %v74_v40 }
  0x96   :  { %v124_v61 = vadd.f32 %v120_v49, %v99_v51 }
  0x97   :  { %v134_v56 = vpop.permute.xlu0 %133 }
  0x98   :  { %v104_v28 = vpop.permute.xlu1 %103 }
  0x99   :  { %v119_v50 = vmul.f32 %v118_v41, %v104_v28 }
  0x9a   :  { %v166_v7 = vpop.permute.xlu2 %165 }
  0x9b   :  { %v123_v60 = vadd.f32 %v119_v50, %v98_v55 }
  0x9d   :  { %v151_v3 = vadd.f32 %v134_v56, %v123_v60 }
  0x9f   :  { %v155_v9 = vmax.f32 %v151_v3, 0.0  ;;  %v171_v11 = vpop.permute.xlu0 %170 }
  0xa0   :  { %v112_v37 = vpop.permute.xlu1 %111 }
  0xa1   :  { %v121_v63 = vmul.f32 %v118_v41, %v112_v37  ;;  %v183_v14 = vmul.f32 %v166_v7, %v155_v9 }
  0xa2   :  { %v181_v18 = vpop.permute.xlu2 %180 }
  0xa3   :  { %v125_v4 = vadd.f32 %v121_v63, %v100_v2  ;;  %v188_v20 = vsel %vm187_vm0, %v183_v14, 0.0 }
  0xa5   :  { %v153_v13 = vadd.f32 %v144_v52, %v125_v4 }
  0xa7   :  { %v157_v17 = vmax.f32 %v153_v13, 0.0 }
  0xa9   :  { %v139_v57 = vpop.permute.xlu1 %138 }
  0xaa   :  { %v152_v0 = vadd.f32 %v139_v57, %v124_v61 }
  0xac   :  { %v156_v5 = vmax.f32 %v152_v0, 0.0 }
  0xae   :  { %v184_v12 = vmul.f32 %v171_v11, %v156_v5 }
  0xb0   :  { %v189_v16 = vsel %vm187_vm0, %v184_v12, 0.0 }
  0xb1   :  { %v149_v8 = vpop.permute.xlu1 %148  ;;  %v190_v23 = vadd.f32 %v189_v16, %v188_v20 }
  0xb2   :  { %v154_v10 = vadd.f32 %v149_v8, %v126_v6 }
  0xb4   :  { %v158_v15 = vmax.f32 %v154_v10, 0.0 }
  0xb6   :  { %v186_v21 = vmul.f32 %v181_v18, %v158_v15 }
  0xb8   :  { %v193_v26 = vsel %vm187_vm0, %v186_v21, 0.0 }
  0xb9   :  { %v176_v19 = vpop.permute.xlu1 %175 }
  0xba   :  { %v185_v22 = vmul.f32 %v176_v19, %v157_v17 }
  0xbc   :  { %v191_v24 = vsel %vm187_vm0, %v185_v22, 0.0 }
  0xbd   :  { %v192_v25 = vadd.f32 %v191_v24, %v190_v23 }
  0xbf   :  { %v194_v27 = vadd.f32 %v193_v26, %v192_v25 }
  0xc1   :  { %v195_v28 = vrot.slane %v194_v27, 4 }
  0xc3   :  { %v196_v29 = vadd.f32 %v195_v28, %v194_v27 }
  0xc5   :  { %v197_v30 = vrot.slane %v196_v29, 2 }
  0xc7   :  { %v198_v31 = vadd.f32 %v197_v30, %v196_v29 }
  0xc9   :  { %v199_v32 = vrot.slane %v198_v31, 1 }
  0xcb   :  { %v200_v34 = vadd.f32 %v199_v32, %v198_v31 }
  0xcd   :  { %v203_v35 = vadd.f32 %v202_v33, %v200_v34 }
  0xcf   :  { %v204_v36 = vmax.f32 %v203_v35, 0.0 }
  0xd1   :  { %206 = vst.msk [vmem:[#allocation3] sm:$0x1] %vm205_vm1, %v204_v36 }
  0xd2   :  { %217 = dma.vmem_to_hbm [thread:$0]  %s213_s18, 16, %s215_s21, [#allocation4]  }
  0xd3   :  { %264 = dma.done.wait [#allocation4], 16  }
  0xd4   :  { %265 = vsyncadd [#allocation4], 4294967280 }
  0xd5   :  { %222 = vsyncpa [#allocation4], 1 }

</bundles_post_ra>
